<compile_context>
chip_gen: v7x
topology: tpu7x:2x2x1
jax: 0.10.0
libtpu: 0.0.40
codegen_flags: <defaults>
</compile_context>

<pallas_src>
import jax
import jax.numpy as jnp
from jax import lax
from jax.experimental import pallas as pl

H = 5          # hidden width of every layer
BN_EPS = 1e-5  # nn.BatchNorm1d default


def _batchnorm_train(h):
    """BatchNorm1d(affine=False), training mode: batch mean, biased variance."""
    mean = jnp.mean(h, axis=0, keepdims=True)
    var = jnp.mean((h - mean) ** 2, axis=0, keepdims=True)
    return (h - mean) * lax.rsqrt(var + BN_EPS)


def para_5x5x5_kernel(x_ref, w1_ref, b1_ref, w2_ref, b2_ref,
                      w3_ref, b3_ref, w4_ref, b4_ref, o_ref):
    # x_ref : (N, 1) f32
    # w1_ref: (1, 5)  Linear(1,5) weight, reshaped (fan_in == 1 -> row vector)
    # w2_ref: (5, 5)  native PyTorch (out, in) layout
    # w3_ref: (5, 5)  native PyTorch (out, in) layout
    # w4_ref: (1, 5)  Linear(5,1) weight, native layout
    # b*_ref: (1, 5) / (1, 1)
    # o_ref : (N, 1) f32
    x = x_ref[...]

    # Layer 1: Linear(1, 5) is a rank-1 product -> broadcast multiply (VPU).
    h = x * w1_ref[...] + b1_ref[...]
    h = _batchnorm_train(jnp.maximum(h, 0.0))

    # Layers 2-3: Linear(5, 5). Contract on the in-features axis of the native
    # (out, in) weight (NT matmul) so no transpose is materialized anywhere.
    dn = (((1,), (1,)), ((), ()))
    h = lax.dot_general(h, w2_ref[...], dn,
                        preferred_element_type=jnp.float32) + b2_ref[...]
    h = _batchnorm_train(jnp.maximum(h, 0.0))

    h = lax.dot_general(h, w3_ref[...], dn,
                        preferred_element_type=jnp.float32) + b3_ref[...]
    h = _batchnorm_train(jnp.maximum(h, 0.0))

    # Layer 4: Linear(5, 1) -> elementwise multiply + lane reduce.
    o_ref[...] = jnp.sum(h * w4_ref[...], axis=1, keepdims=True) + b4_ref[...]


def _full_spec(shape):
    return pl.BlockSpec(shape, lambda: (0,) * len(shape))


@jax.jit
def para_5x5x5_forward(x, params):
    """x: (N, 1) f32; params: (w1,b1,w2,b2,w3,b3,w4,b4) in PyTorch layout."""
    w1, b1, w2, b2, w3, b3, w4, b4 = params
    n = x.shape[0]
    x2d = x.reshape(n, 1).astype(jnp.float32)

    # Trivial parameter reshapes (pure reshapes, no transposes); they stay
    # inside this jit so they never become standalone HBM passes.
    w1r = w1.reshape(1, H)          # (5,1) -> (1,5)
    b1r = b1.reshape(1, H)
    b2r = b2.reshape(1, H)
    b3r = b3.reshape(1, H)
    w4r = w4.reshape(1, H)          # already (1,5)
    b4r = b4.reshape(1, 1)

    args = (x2d, w1r, b1r, w2, b2r, w3, b3r, w4r, b4r)
    return pl.pallas_call(
        para_5x5x5_kernel,
        out_shape=jax.ShapeDtypeStruct((n, 1), jnp.float32),
        in_specs=[_full_spec(a.shape) for a in args],
        out_specs=_full_spec((n, 1)),
    )(*args)


def _ref_forward(x, params):
    """Pure-JAX reference of the PyTorch forward (training-mode BN)."""
    w1, b1, w2, b2, w3, b3, w4, b4 = params
    h = x.reshape(x.shape[0], 1)
    for w, b in ((w1, b1), (w2, b2), (w3, b3)):
        h = h @ w.T + b
        h = jnp.maximum(h, 0.0)
        m = jnp.mean(h, axis=0, keepdims=True)
        v = jnp.mean((h - m) ** 2, axis=0, keepdims=True)
        h = (h - m) / jnp.sqrt(v + BN_EPS)
    return h @ w4.T + b4


def _linear_init(key, out_f, in_f):
    """PyTorch nn.Linear default init: U(-1/sqrt(fan_in), 1/sqrt(fan_in))."""
    kw, kb = jax.random.split(key)
    bound = 1.0 / (in_f ** 0.5)
    w = jax.random.uniform(kw, (out_f, in_f), jnp.float32, -bound, bound)
    b = jax.random.uniform(kb, (out_f,), jnp.float32, -bound, bound)
    return w, b


if __name__ == "__main__":
    key = jax.random.PRNGKey(0)
    kx, k1, k2, k3, k4 = jax.random.split(key, 5)

    batch = 8
    x = jax.random.normal(kx, (batch, 1), dtype=jnp.float32)

    w1, b1 = _linear_init(k1, H, 1)
    w2, b2 = _linear_init(k2, H, H)
    w3, b3 = _linear_init(k3, H, H)
    w4, b4 = _linear_init(k4, 1, H)
    params = (w1, b1, w2, b2, w3, b3, w4, b4)

    out = jax.block_until_ready(para_5x5x5_forward(x, params))
    ref = jax.block_until_ready(_ref_forward(x, params))

    assert out.shape == (batch, 1)
    assert bool(jnp.all(jnp.abs(out - ref) < 1e-4))

    print("KERNEL_OK")
</pallas_src>

<mosaic_0001>
module attributes {stable_mosaic.version = 11 : i64} {
  func.func @para_5x5x5_kernel(%arg0: memref<8x1xf32, #tpu.memory_space<vmem>>, %arg1: memref<1x5xf32, #tpu.memory_space<vmem>>, %arg2: memref<1x5xf32, #tpu.memory_space<vmem>>, %arg3: memref<5x5xf32, #tpu.memory_space<vmem>>, %arg4: memref<1x5xf32, #tpu.memory_space<vmem>>, %arg5: memref<5x5xf32, #tpu.memory_space<vmem>>, %arg6: memref<1x5xf32, #tpu.memory_space<vmem>>, %arg7: memref<1x5xf32, #tpu.memory_space<vmem>>, %arg8: memref<1x1xf32, #tpu.memory_space<vmem>>, %arg9: memref<8x1xf32, #tpu.memory_space<vmem>>) attributes {dimension_semantics = [], scalar_prefetch = 0 : i64, scratch_operands = 0 : i64, tpu.core_type = #tpu.core_type<tc>} {
    %c0 = arith.constant 0 : index
    %c0_0 = arith.constant 0 : index
    %0 = vector.load %arg0[%c0, %c0_0] : memref<8x1xf32, #tpu.memory_space<vmem>>, vector<8x1xf32>
    %c0_1 = arith.constant 0 : index
    %c0_2 = arith.constant 0 : index
    %1 = vector.load %arg1[%c0_1, %c0_2] : memref<1x5xf32, #tpu.memory_space<vmem>>, vector<1x5xf32>
    %2 = vector.broadcast %0 : vector<8x1xf32> to vector<8x5xf32>
    %3 = vector.broadcast %1 : vector<1x5xf32> to vector<8x5xf32>
    %4 = arith.mulf %2, %3 : vector<8x5xf32>
    %c0_3 = arith.constant 0 : index
    %c0_4 = arith.constant 0 : index
    %5 = vector.load %arg2[%c0_3, %c0_4] : memref<1x5xf32, #tpu.memory_space<vmem>>, vector<1x5xf32>
    %6 = vector.broadcast %5 : vector<1x5xf32> to vector<8x5xf32>
    %7 = arith.addf %4, %6 : vector<8x5xf32>
    %cst = arith.constant 0.000000e+00 : f32
    %8 = vector.broadcast %cst : f32 to vector<8x5xf32>
    %9 = arith.maximumf %7, %8 : vector<8x5xf32>
    %cst_5 = arith.constant dense<0.000000e+00> : vector<5xf32>
    %10 = vector.multi_reduction <add>, %9, %cst_5 [0] : vector<8x5xf32> to vector<5xf32>
    %11 = vector.shape_cast %10 : vector<5xf32> to vector<1x5xf32>
    %cst_6 = arith.constant 8.000000e+00 : f32
    %12 = vector.broadcast %cst_6 : f32 to vector<1x5xf32>
    %13 = arith.divf %11, %12 : vector<1x5xf32>
    %14 = vector.broadcast %13 : vector<1x5xf32> to vector<8x5xf32>
    %15 = arith.subf %9, %14 : vector<8x5xf32>
    %16 = arith.mulf %15, %15 : vector<8x5xf32>
    %cst_7 = arith.constant dense<0.000000e+00> : vector<5xf32>
    %17 = vector.multi_reduction <add>, %16, %cst_7 [0] : vector<8x5xf32> to vector<5xf32>
    %18 = vector.shape_cast %17 : vector<5xf32> to vector<1x5xf32>
    %cst_8 = arith.constant 8.000000e+00 : f32
    %19 = vector.broadcast %cst_8 : f32 to vector<1x5xf32>
    %20 = arith.divf %18, %19 : vector<1x5xf32>
    %21 = vector.broadcast %13 : vector<1x5xf32> to vector<8x5xf32>
    %22 = arith.subf %9, %21 : vector<8x5xf32>
    %cst_9 = arith.constant 9.99999974E-6 : f32
    %23 = vector.broadcast %cst_9 : f32 to vector<1x5xf32>
    %24 = arith.addf %20, %23 : vector<1x5xf32>
    %25 = math.rsqrt %24 : vector<1x5xf32>
    %26 = vector.broadcast %25 : vector<1x5xf32> to vector<8x5xf32>
    %27 = arith.mulf %22, %26 : vector<8x5xf32>
    %c0_10 = arith.constant 0 : index
    %c0_11 = arith.constant 0 : index
    %28 = vector.load %arg3[%c0_10, %c0_11] : memref<5x5xf32, #tpu.memory_space<vmem>>, vector<5x5xf32>
    %cst_12 = arith.constant dense<0.000000e+00> : vector<8x5xf32>
    %29 = tpu.matmul %27, %28, %cst_12 {dimension_numbers = #tpu.dot_dimension_numbers<[1], [1], [0], [0], [0, 0, 1, 0], [], []>} : vector<8x5xf32>, vector<5x5xf32>, vector<8x5xf32> -> vector<8x5xf32>
    %c0_13 = arith.constant 0 : index
    %c0_14 = arith.constant 0 : index
    %30 = vector.load %arg4[%c0_13, %c0_14] : memref<1x5xf32, #tpu.memory_space<vmem>>, vector<1x5xf32>
    %31 = vector.broadcast %30 : vector<1x5xf32> to vector<8x5xf32>
    %32 = arith.addf %29, %31 : vector<8x5xf32>
    %cst_15 = arith.constant 0.000000e+00 : f32
    %33 = vector.broadcast %cst_15 : f32 to vector<8x5xf32>
    %34 = arith.maximumf %32, %33 : vector<8x5xf32>
    %cst_16 = arith.constant dense<0.000000e+00> : vector<5xf32>
    %35 = vector.multi_reduction <add>, %34, %cst_16 [0] : vector<8x5xf32> to vector<5xf32>
    %36 = vector.shape_cast %35 : vector<5xf32> to vector<1x5xf32>
    %cst_17 = arith.constant 8.000000e+00 : f32
    %37 = vector.broadcast %cst_17 : f32 to vector<1x5xf32>
    %38 = arith.divf %36, %37 : vector<1x5xf32>
    %39 = vector.broadcast %38 : vector<1x5xf32> to vector<8x5xf32>
    %40 = arith.subf %34, %39 : vector<8x5xf32>
    %41 = arith.mulf %40, %40 : vector<8x5xf32>
    %cst_18 = arith.constant dense<0.000000e+00> : vector<5xf32>
    %42 = vector.multi_reduction <add>, %41, %cst_18 [0] : vector<8x5xf32> to vector<5xf32>
    %43 = vector.shape_cast %42 : vector<5xf32> to vector<1x5xf32>
    %cst_19 = arith.constant 8.000000e+00 : f32
    %44 = vector.broadcast %cst_19 : f32 to vector<1x5xf32>
    %45 = arith.divf %43, %44 : vector<1x5xf32>
    %46 = vector.broadcast %38 : vector<1x5xf32> to vector<8x5xf32>
    %47 = arith.subf %34, %46 : vector<8x5xf32>
    %cst_20 = arith.constant 9.99999974E-6 : f32
    %48 = vector.broadcast %cst_20 : f32 to vector<1x5xf32>
    %49 = arith.addf %45, %48 : vector<1x5xf32>
    %50 = math.rsqrt %49 : vector<1x5xf32>
    %51 = vector.broadcast %50 : vector<1x5xf32> to vector<8x5xf32>
    %52 = arith.mulf %47, %51 : vector<8x5xf32>
    %c0_21 = arith.constant 0 : index
    %c0_22 = arith.constant 0 : index
    %53 = vector.load %arg5[%c0_21, %c0_22] : memref<5x5xf32, #tpu.memory_space<vmem>>, vector<5x5xf32>
    %cst_23 = arith.constant dense<0.000000e+00> : vector<8x5xf32>
    %54 = tpu.matmul %52, %53, %cst_23 {dimension_numbers = #tpu.dot_dimension_numbers<[1], [1], [0], [0], [0, 0, 1, 0], [], []>} : vector<8x5xf32>, vector<5x5xf32>, vector<8x5xf32> -> vector<8x5xf32>
    %c0_24 = arith.constant 0 : index
    %c0_25 = arith.constant 0 : index
    %55 = vector.load %arg6[%c0_24, %c0_25] : memref<1x5xf32, #tpu.memory_space<vmem>>, vector<1x5xf32>
    %56 = vector.broadcast %55 : vector<1x5xf32> to vector<8x5xf32>
    %57 = arith.addf %54, %56 : vector<8x5xf32>
    %cst_26 = arith.constant 0.000000e+00 : f32
    %58 = vector.broadcast %cst_26 : f32 to vector<8x5xf32>
    %59 = arith.maximumf %57, %58 : vector<8x5xf32>
    %cst_27 = arith.constant dense<0.000000e+00> : vector<5xf32>
    %60 = vector.multi_reduction <add>, %59, %cst_27 [0] : vector<8x5xf32> to vector<5xf32>
    %61 = vector.shape_cast %60 : vector<5xf32> to vector<1x5xf32>
    %cst_28 = arith.constant 8.000000e+00 : f32
    %62 = vector.broadcast %cst_28 : f32 to vector<1x5xf32>
    %63 = arith.divf %61, %62 : vector<1x5xf32>
    %64 = vector.broadcast %63 : vector<1x5xf32> to vector<8x5xf32>
    %65 = arith.subf %59, %64 : vector<8x5xf32>
    %66 = arith.mulf %65, %65 : vector<8x5xf32>
    %cst_29 = arith.constant dense<0.000000e+00> : vector<5xf32>
    %67 = vector.multi_reduction <add>, %66, %cst_29 [0] : vector<8x5xf32> to vector<5xf32>
    %68 = vector.shape_cast %67 : vector<5xf32> to vector<1x5xf32>
    %cst_30 = arith.constant 8.000000e+00 : f32
    %69 = vector.broadcast %cst_30 : f32 to vector<1x5xf32>
    %70 = arith.divf %68, %69 : vector<1x5xf32>
    %71 = vector.broadcast %63 : vector<1x5xf32> to vector<8x5xf32>
    %72 = arith.subf %59, %71 : vector<8x5xf32>
    %cst_31 = arith.constant 9.99999974E-6 : f32
    %73 = vector.broadcast %cst_31 : f32 to vector<1x5xf32>
    %74 = arith.addf %70, %73 : vector<1x5xf32>
    %75 = math.rsqrt %74 : vector<1x5xf32>
    %76 = vector.broadcast %75 : vector<1x5xf32> to vector<8x5xf32>
    %77 = arith.mulf %72, %76 : vector<8x5xf32>
    %c0_32 = arith.constant 0 : index
    %c0_33 = arith.constant 0 : index
    %78 = vector.load %arg7[%c0_32, %c0_33] : memref<1x5xf32, #tpu.memory_space<vmem>>, vector<1x5xf32>
    %79 = vector.broadcast %78 : vector<1x5xf32> to vector<8x5xf32>
    %80 = arith.mulf %77, %79 : vector<8x5xf32>
    %cst_34 = arith.constant dense<0.000000e+00> : vector<8xf32>
    %81 = vector.multi_reduction <add>, %80, %cst_34 [1] : vector<8x5xf32> to vector<8xf32>
    %82 = vector.shape_cast %81 : vector<8xf32> to vector<8x1xf32>
    %c0_35 = arith.constant 0 : index
    %c0_36 = arith.constant 0 : index
    %83 = vector.load %arg8[%c0_35, %c0_36] : memref<1x1xf32, #tpu.memory_space<vmem>>, vector<1x1xf32>
    %84 = vector.broadcast %83 : vector<1x1xf32> to vector<8x1xf32>
    %85 = arith.addf %82, %84 : vector<8x1xf32>
    %c0_37 = arith.constant 0 : index
    %c0_38 = arith.constant 0 : index
    %86 = vector.load %arg9[%c0_37, %c0_38] : memref<8x1xf32, #tpu.memory_space<vmem>>, vector<8x1xf32>
    tpu.vector_store %arg9[%c0_37, %c0_38], %85 {strides = array<i32>} : memref<8x1xf32, #tpu.memory_space<vmem>>, vector<8x1xf32>,
    return
  }
}

</mosaic_0001>

<bundles_post_ra>
// kernel: para_5x5x5_forward.1
= control target key start
LH: loop header
LB: loop body
LE: loop exit
PB: predicated region body
PF: predicated region fallthrough
CT: control target
= control target key end

     0   :  { %v351_v0 = vmov 0   ;;  %vm57_vm0 = vcmask 39936   ;;  %v352_v2 = vmov 0.0   ;;  %vm353_vm1 = vmmov 0   ;;  %s445_s0 = inlined_call_operand.vmem [shape: f32[8,1], index: 0, kind: input, shape index: {}]   ;;  %s446_s3 = inlined_call_operand.vmem [shape: f32[5,5], index: 3, kind: input, shape index: {}]   ;;  %s447_s1 = inlined_call_operand.vmem [shape: f32[1,5], index: 1, kind: input, shape index: {}]   ;;  %s448_s2 = inlined_call_operand.vmem [shape: f32[1,5], index: 2, kind: input, shape index: {}]   ;;  %s449_s5 = inlined_call_operand.vmem [shape: f32[5,5], index: 5, kind: input, shape index: {}]   ;;  %s450_s4 = inlined_call_operand.vmem [shape: f32[1,5], index: 4, kind: input, shape index: {}]   ;;  %s451_s8 = inlined_call_operand.<no memory space> [shape: f32[1,1], index: 8, kind: input, shape index: {}]   ;;  %s452_s6 = inlined_call_operand.vmem [shape: f32[1,5], index: 6, kind: input, shape index: {}]   ;;  %s453_s7 = inlined_call_operand.vmem [shape: f32[1,5], index: 7, kind: input, shape index: {}]   ;;  %s454_s9 = inlined_call_operand.vmem [shape: f32[8,1], index: 9, kind: output, shape index: {}]  }
   0x1   :  { %344 = vset.pattern.permute.xlu0 %v351_v0  ;;  %v34_v1 = vld [vmem:[%s445_s0] sm:$0xff]  ;;  %331 = vmatprep.subr.mxu0 %v352_v2  ;;  %v14_v58 = vstv %s451_s8  ;;  %vm311_vm2 = vcmask 7168  }
   0x2   :  { %38 = vperm.xlu0 %344, %v34_v1   ;;  %v80_v3 = vld [vmem:[%s446_s3] sm:$0x1f]  ;;  %336 = vmatprep.subr.mxu1 %v352_v2  ;;  %15 = vst [vmem:[#allocation2] sm:$0x1] %v14_v58 }
   0x3   :  { %332 = vmatpush3.xpose.msk.msra.mxu0 %vm57_vm0, %v80_v3  ;;  %333 = vmatprep.mubr.msk.f32.mxu0 %vm353_vm1, %v352_v2  ;;  %v317_v4 = vld [vmem:[%s447_s1] ss:$0 sm:$0xff] }
   0x4   :  { %338 = vmatprep.mubr.msk.f32.mxu1 %vm353_vm1, %v352_v2  ;;  %v318_v5 = vld [vmem:[%s448_s2] ss:$0 sm:$0xff] }
   0x5   :  { %v186_v31 = vld [vmem:[%s449_s5] sm:$0x1f] }
   0x6   :  { %337 = vmatpush3.xpose.msk.msra.mxu1 %vm57_vm0, %v186_v31  ;;  %v319_v32 = vld [vmem:[%s450_s4] ss:$0 sm:$0xff] }
   0x7   :  { %v322_v59 = vld [vmem:[%s452_s6] ss:$0 sm:$0xff] }
  0x81   :  { %v39_v6 = vpop.permute.xlu0 %38 }
  0x82   :  { %v47_v7 = vmul.f32 %v317_v4, %v39_v6 }
  0x84   :  { %v55_v8 = vadd.f32 %v318_v5, %v47_v7 }
  0x86   :  { %v56_v9 = vmax.f32 %v55_v8, 0.0 }
  0x88   :  { %v58_v10 = vsel %vm57_vm0, %v56_v9, 0.0 }
  0x89   :  { %v59_v11 = vrot.slane %v58_v10, 4 }
  0x8b   :  { %v60_v12 = vadd.f32 %v59_v11, %v58_v10 }
  0x8d   :  { %v61_v13 = vrot.slane %v60_v12, 2 }
  0x8f   :  { %v62_v14 = vadd.f32 %v61_v13, %v60_v12 }
  0x91   :  { %v63_v15 = vrot.slane %v62_v14, 1 }
  0x93   :  { %v64_v16 = vadd.f32 %v63_v15, %v62_v14 }
  0x95   :  { %v66_v17 = vmul.f32 0.125, %v64_v16 }
  0x97   :  { %v67_v18 = vsub.f32 %v56_v9, %v66_v17 }
  0x99   :  { %v68_v19 = vmul.f32 %v67_v18, %v67_v18 }
  0x9b   :  { %v69_v20 = vsel %vm57_vm0, %v68_v19, 0.0 }
  0x9c   :  { %v70_v21 = vrot.slane %v69_v20, 4 }
  0x9e   :  { %v71_v22 = vadd.f32 %v70_v21, %v69_v20  ;;  %v325_v20 = vld [vmem:[%s453_s7] ss:$0 sm:$0xff] }
  0xa0   :  { %v72_v23 = vrot.slane %v71_v22, 2 }
  0xa2   :  { %v73_v24 = vadd.f32 %v72_v23, %v71_v22 }
  0xa4   :  { %v74_v25 = vrot.slane %v73_v24, 1 }
  0xa6   :  { %v75_v26 = vadd.f32 %v74_v25, %v73_v24  ;;  %v326_v24 = vld [vmem:[#allocation2] ss:$0 sm:$0xff] }
  0xa8   :  { %v76_v27 = vmul.f32 0.125, %v75_v26 }
  0xaa   :  { %v77_v28 = vadd.f32 1e-05, %v76_v27 }
  0xac   :  { %345 = vrsqrt.f32 %v77_v28 }
  0xb6   :  { %v346_v29 = vpop.eup %345 }
  0xb7   :  { %v79_v30 = vmul.f32 %v346_v29, %v67_v18 }
  0xb9   :  { %334 = vmatmul.mubr.msk.f32.vlgmr.msra.gmra.mrb[0].mxu0 %vm57_vm0, %v79_v30 }
 0x18c   :  { %v160_v33 = vpop.f32.mrb[0].mxu0 }
 0x18d   :  { %v161_v34 = vadd.f32 %v319_v32, %v160_v33  ;;  %v335_v35 = vpop.f32.mrb[1].mxu0 }
 0x18f   :  { %v164_v36 = vmax.f32 %v161_v34, 0.0 }
 0x191   :  { %v165_v37 = vsel %vm57_vm0, %v164_v36, 0.0 }
 0x192   :  { %v166_v38 = vrot.slane %v165_v37, 4 }
 0x194   :  { %v167_v39 = vadd.f32 %v166_v38, %v165_v37 }
 0x196   :  { %v168_v40 = vrot.slane %v167_v39, 2 }
 0x198   :  { %v169_v41 = vadd.f32 %v168_v40, %v167_v39 }
 0x19a   :  { %v170_v42 = vrot.slane %v169_v41, 1 }
 0x19c   :  { %v171_v43 = vadd.f32 %v170_v42, %v169_v41 }
 0x19e   :  { %v172_v44 = vmul.f32 0.125, %v171_v43 }
 0x1a0   :  { %v173_v45 = vsub.f32 %v164_v36, %v172_v44 }
 0x1a2   :  { %v174_v46 = vmul.f32 %v173_v45, %v173_v45 }
 0x1a4   :  { %v175_v47 = vsel %vm57_vm0, %v174_v46, 0.0 }
 0x1a5   :  { %v176_v48 = vrot.slane %v175_v47, 4 }
 0x1a7   :  { %v177_v49 = vadd.f32 %v176_v48, %v175_v47 }
 0x1a9   :  { %v178_v50 = vrot.slane %v177_v49, 2 }
 0x1ab   :  { %v179_v51 = vadd.f32 %v178_v50, %v177_v49 }
 0x1ad   :  { %v180_v52 = vrot.slane %v179_v51, 1 }
 0x1af   :  { %v181_v53 = vadd.f32 %v180_v52, %v179_v51 }
 0x1b1   :  { %v182_v54 = vmul.f32 0.125, %v181_v53 }
 0x1b3   :  { %v183_v55 = vadd.f32 1e-05, %v182_v54 }
 0x1b5   :  { %347 = vrsqrt.f32 %v183_v55 }
 0x1bf   :  { %v348_v56 = vpop.eup %347 }
 0x1c0   :  { %v185_v57 = vmul.f32 %v348_v56, %v173_v45 }
 0x1c2   :  { %339 = vmatmul.mubr.msk.f32.vlgmr.msra.gmra.mrb[0].mxu1 %vm57_vm0, %v185_v57 }
 0x295   :  { %v266_v60 = vpop.f32.mrb[0].mxu1 }
 0x296   :  { %v267_v61 = vadd.f32 %v322_v59, %v266_v60  ;;  %v340_v62 = vpop.f32.mrb[1].mxu1 }
 0x298   :  { %v270_v63 = vmax.f32 %v267_v61, 0.0 }
 0x29a   :  { %v271_v0 = vsel %vm57_vm0, %v270_v63, 0.0 }
 0x29b   :  { %v272_v1 = vrot.slane %v271_v0, 4 }
 0x29d   :  { %v273_v2 = vadd.f32 %v272_v1, %v271_v0 }
 0x29f   :  { %v274_v3 = vrot.slane %v273_v2, 2 }
 0x2a1   :  { %v275_v4 = vadd.f32 %v274_v3, %v273_v2 }
 0x2a3   :  { %v276_v5 = vrot.slane %v275_v4, 1 }
 0x2a5   :  { %v277_v6 = vadd.f32 %v276_v5, %v275_v4 }
 0x2a7   :  { %v278_v7 = vmul.f32 0.125, %v277_v6 }
 0x2a9   :  { %v279_v8 = vsub.f32 %v270_v63, %v278_v7 }
 0x2ab   :  { %v280_v9 = vmul.f32 %v279_v8, %v279_v8 }
 0x2ad   :  { %v281_v10 = vsel %vm57_vm0, %v280_v9, 0.0 }
 0x2ae   :  { %v282_v11 = vrot.slane %v281_v10, 4 }
 0x2b0   :  { %v283_v12 = vadd.f32 %v282_v11, %v281_v10 }
 0x2b2   :  { %v284_v13 = vrot.slane %v283_v12, 2 }
 0x2b4   :  { %v285_v14 = vadd.f32 %v284_v13, %v283_v12 }
 0x2b6   :  { %v286_v15 = vrot.slane %v285_v14, 1 }
 0x2b8   :  { %v287_v16 = vadd.f32 %v286_v15, %v285_v14 }
 0x2ba   :  { %v288_v17 = vmul.f32 0.125, %v287_v16 }
 0x2bc   :  { %v289_v18 = vadd.f32 1e-05, %v288_v17 }
 0x2be   :  { %349 = vrsqrt.f32 %v289_v18 }
 0x2c8   :  { %v350_v19 = vpop.eup %349 }
 0x2c9   :  { %v291_v21 = vmul.f32 %v350_v19, %v279_v8 }
 0x2cb   :  { %v299_v22 = vmul.f32 %v325_v20, %v291_v21 }
 0x2cd   :  { %v300_v23 = vsel %vm57_vm0, %v299_v22, 0.0 }
 0x2ce   :  { %301 = vadd.xlane.f32.xlu0 %v300_v23 }
 0x35b   :  { %v302_v25 = vpop.xlane.xlu0 %301 }
 0x35c   :  { %v310_v26 = vadd.f32 %v326_v24, %v302_v25 }
 0x35e   :  { %312 = vst.msk [vmem:[%s454_s9] sm:$0xff] %vm311_vm2, %v310_v26 }

</bundles_post_ra>
